<compile_context>
chip_gen: v6e
topology: v6e:2x2x1
jax: 0.10.0
libtpu: 0.0.40
codegen_flags: <defaults>
</compile_context>

<pallas_src>
import math
import functools

import jax
import jax.numpy as jnp
from jax.experimental import pallas as pl
from jax.experimental.pallas import tpu as pltpu


# ----------------------------------------------------------------------------
# pe buffer construction (deterministic, matches the PyTorch __init__)
# ----------------------------------------------------------------------------
def make_positional_encoding(d_model: int, max_len: int) -> jnp.ndarray:
    position = jnp.arange(max_len, dtype=jnp.float32)[:, None]          # [max_len, 1]
    div_term = jnp.exp(
        jnp.arange(0, d_model, 2, dtype=jnp.float32)
        * (-math.log(10000.0) / d_model)
    )                                                                    # [d_model//2]
    pe = jnp.zeros((max_len, 1, d_model), dtype=jnp.float32)
    pe = pe.at[:, 0, 0::2].set(jnp.sin(position * div_term))
    pe = pe.at[:, 0, 1::2].set(jnp.cos(position * div_term))
    return pe


# ----------------------------------------------------------------------------
# helpers
# ----------------------------------------------------------------------------
def _vmem_capacity_bytes() -> int:
    """Per-core VMEM capacity; conservative (v7x) default if query unavailable."""
    try:
        return int(pltpu.get_tpu_info().vmem_capacity_bytes)
    except Exception:
        return 64 * 1024 * 1024


def _largest_aligned_divisor(n: int, cap: int, align: int) -> int | None:
    """Largest d with d | n, d <= cap, d % align == 0 (n assumed % align == 0)."""
    cap = min(cap, n)
    start = (cap // align) * align
    for d in range(start, 0, -align):
        if n % d == 0:
            return d
    return None


def _choose_batch_tile(B: int, D: int, itemsize: int, target_block_bytes: int) -> int:
    """How many batches per lane tile.  Full batch unless even an 8-row tile of
    the full lane width exceeds the block budget; any split keeps the lane width
    a multiple of 128 so stores stay unmasked."""
    if 8 * B * D * itemsize <= target_block_bytes:
        return B
    limit = max(1, target_block_bytes // (8 * D * itemsize))
    for bt in range(min(B, limit), 0, -1):
        if B % bt == 0 and (bt * D) % 128 == 0:
            return bt
    return B   # no valid split (rare); keep full lane width


def _choose_seq_tile(s_pad: int, bytes_per_row: int, target_block_bytes: int) -> int:
    """Largest 8-aligned divisor of s_pad within the block budget, capped so the
    seq grid axis has >= 2 steps when possible (feeds both v7x TensorCores)."""
    max_rows = max(8, (target_block_bytes // max(bytes_per_row, 1)) // 8 * 8)
    if s_pad >= 16:
        max_rows = min(max_rows, max(8, (s_pad // 2) // 8 * 8))
    ts = _largest_aligned_divisor(s_pad, max_rows, 8)
    return ts if ts is not None else 8


# ----------------------------------------------------------------------------
# Pallas kernels (blocks are [seq_tile, bt * D]; pe block is [seq_tile, D])
# ----------------------------------------------------------------------------
def _pe_add_kernel(x_ref, pe_ref, o_ref, *, n_batch, d_model):
    pe = pe_ref[...]
    for b in range(n_batch):                       # static lane-slice adds (views)
        sl = slice(b * d_model, (b + 1) * d_model)
        o_ref[:, sl] = (x_ref[:, sl] + pe).astype(o_ref.dtype)


def _pe_add_dropout_kernel(x_ref, pe_ref, scale_ref, o_ref, *, n_batch, d_model):
    # scale_ref holds 0 or 1/(1-p) per element (precomputed keep-mask).
    pe = pe_ref[...]
    for b in range(n_batch):
        sl = slice(b * d_model, (b + 1) * d_model)
        o_ref[:, sl] = ((x_ref[:, sl] + pe) * scale_ref[:, sl]).astype(o_ref.dtype)


# ----------------------------------------------------------------------------
# Wrapper
# ----------------------------------------------------------------------------
def positional_encoding_forward(x, pe, *, dropout_p: float = 0.1,
                                training: bool = False, seed: int = 0,
                                force_pallas: bool = False):
    """x: [S, B, D]; pe: [max_len, 1, D].  Returns dropout(x + pe[:S])."""
    S, B, D = x.shape
    assert pe.shape[0] >= S and pe.shape[2] == D, "pe buffer too small for input"
    dtype = x.dtype
    itemsize = jnp.dtype(dtype).itemsize

    pe_s = pe[:S, 0, :].astype(dtype)              # [S, D] — stays tiny
    use_dropout = training and dropout_p > 0.0
    if use_dropout and dropout_p >= 1.0:           # degenerate: drop everything
        return jnp.zeros_like(x)
    inv_keep = 1.0 / (1.0 - dropout_p) if use_dropout else 1.0

    lane = B * D
    n_bytes = S * lane * itemsize
    small = n_bytes < (1 << 16)                    # < 64 KiB: setup cost dominates
    misaligned = (lane % 128 != 0) or (lane < 128)  # would force masked vst.msk

    if (small or misaligned) and not force_pallas:
        # Tiny / lane-misaligned problems: let XLA fuse the trivial elementwise op.
        y = x + pe_s[:, None, :]
        if use_dropout:
            keep = jax.random.bernoulli(jax.random.PRNGKey(seed),
                                        1.0 - dropout_p, x.shape)
            y = jnp.where(keep, y * jnp.asarray(inv_keep, dtype),
                          jnp.asarray(0.0, dtype))
        return y.astype(dtype)

    # ---------------- Pallas path ----------------
    vmem_cap = _vmem_capacity_bytes()
    # ~8 MiB blocks on 128 MiB parts (v5e/v6e), ~4 MiB on v7x (64 MiB physical);
    # footprint ~ 2x(in) + 2x(out) + 2x(scale, dropout only) + pe stays well
    # inside the explicit vmem_limit below.
    target_block_bytes = min(8 << 20, max(1 << 20, vmem_cap // 16))

    s_pad = ((S + 7) // 8) * 8                     # pad ragged S instead of one big block
    bt = _choose_batch_tile(B, D, itemsize, target_block_bytes)
    lane_tile = bt * D
    ts = _choose_seq_tile(s_pad, lane_tile * itemsize, target_block_bytes)
    grid = (s_pad // ts, B // bt)

    # Lane-dense 2-D views (free reshape over contiguous [S, B, D] memory).
    x2 = x.reshape(S, lane)
    pe2 = pe_s
    if s_pad != S:
        x2 = jnp.pad(x2, ((0, s_pad - S), (0, 0)))
        pe2 = jnp.pad(pe2, ((0, s_pad - S), (0, 0)))

    x_spec = pl.BlockSpec((ts, lane_tile), lambda i, j: (i, j))
    pe_spec = pl.BlockSpec((ts, D), lambda i, j: (i, 0))     # broadcast over lane axis
    out_spec = pl.BlockSpec((ts, lane_tile), lambda i, j: (i, j))
    out_shape = jax.ShapeDtypeStruct((s_pad, lane), dtype)

    cparams = pltpu.CompilerParams(
        dimension_semantics=("parallel", "parallel"),
        vmem_limit_bytes=int(vmem_cap // 2),
    )
    n_elem = s_pad * lane

    if use_dropout:
        # Keep-mask generated with jax.random (distributional semantics match
        # nn.Dropout: keep prob 1-p, survivors scaled by 1/(1-p)).
        # TODO(synk): on real TPU hardware an in-kernel pltpu.prng_random_bits
        # mask would avoid this extra HBM stream, but it has no CPU/interpret
        # lowering, so the portable path precomputes the scale array.
        keep = jax.random.bernoulli(jax.random.PRNGKey(seed),
                                    1.0 - dropout_p, (s_pad, lane))
        scale2 = jnp.where(keep, jnp.asarray(inv_keep, dtype),
                           jnp.asarray(0.0, dtype))
        kernel = functools.partial(_pe_add_dropout_kernel, n_batch=bt, d_model=D)
        cost = pl.CostEstimate(flops=2 * n_elem, transcendentals=0,
                               bytes_accessed=(3 * n_elem + s_pad * D) * itemsize)
        out2 = pl.pallas_call(
            kernel,
            grid=grid,
            in_specs=[x_spec, pe_spec,
                      pl.BlockSpec((ts, lane_tile), lambda i, j: (i, j))],
            out_specs=out_spec,
            out_shape=out_shape,
            compiler_params=cparams,
            cost_estimate=cost,
        )(x2, pe2, scale2)
    else:
        kernel = functools.partial(_pe_add_kernel, n_batch=bt, d_model=D)
        cost = pl.CostEstimate(flops=n_elem, transcendentals=0,
                               bytes_accessed=(2 * n_elem + s_pad * D) * itemsize)
        out2 = pl.pallas_call(
            kernel,
            grid=grid,
            in_specs=[x_spec, pe_spec],
            out_specs=out_spec,
            out_shape=out_shape,
            compiler_params=cparams,
            cost_estimate=cost,
        )(x2, pe2)

    return out2[:S].reshape(S, B, D)


# ----------------------------------------------------------------------------
# Main
# ----------------------------------------------------------------------------
if __name__ == "__main__":
    d_model = 128        # lane width B*D = 512 (128-aligned -> unmasked stores)
    max_len = 128
    seq_len = 64
    batch = 4
    dropout_p = 0.1

    key = jax.random.PRNGKey(0)
    x = jax.random.normal(key, (seq_len, batch, d_model), dtype=jnp.float32)
    pe = make_positional_encoding(d_model, max_len)

    # Eval-mode forward (deterministic): out = x + pe[:seq_len]
    out = positional_encoding_forward(x, pe, dropout_p=dropout_p, training=False)
    out = jax.block_until_ready(out)
    ref = x + pe[:seq_len]
    assert out.shape == (seq_len, batch, d_model)
    assert jnp.allclose(out, ref, atol=1e-6, rtol=1e-6), "mismatch vs reference"

    # Training-mode forward: every surviving element must equal ref / (1 - p).
    out_tr = positional_encoding_forward(x, pe, dropout_p=dropout_p,
                                         training=True, seed=123)
    out_tr = jax.block_until_ready(out_tr)
    assert out_tr.shape == (seq_len, batch, d_model)
    kept = out_tr != 0.0
    scaled_ref = ref / (1.0 - dropout_p)
    assert jnp.allclose(jnp.where(kept, out_tr, 0.0),
                        jnp.where(kept, scaled_ref, 0.0),
                        atol=1e-5, rtol=1e-5), "dropout-path mismatch on kept values"

    print("KERNEL_OK")
</pallas_src>

<mosaic_0001>
module attributes {stable_mosaic.version = 11 : i64} {
  func.func @_pe_add_kernel(%arg0: i32, %arg1: i32, %arg2: memref<32x512xf32, #tpu.memory_space<vmem>>, %arg3: memref<32x128xf32, #tpu.memory_space<vmem>>, %arg4: memref<32x512xf32, #tpu.memory_space<vmem>>) attributes {dimension_semantics = [#tpu.dimension_semantics<parallel>, #tpu.dimension_semantics<parallel>], iteration_bounds = array<i64: 2, 1>, scalar_prefetch = 0 : i64, scratch_operands = 0 : i64, tpu.core_type = #tpu.core_type<tc>, window_params = [{transform_indices = @transform_0, window_bounds = array<i64: 32, 512>}, {transform_indices = @transform_1, window_bounds = array<i64: 32, 128>}, {transform_indices = @transform_2, window_bounds = array<i64: 32, 512>}]} {
    %c0 = arith.constant 0 : index
    %c0_0 = arith.constant 0 : index
    %0 = vector.load %arg3[%c0, %c0_0] : memref<32x128xf32, #tpu.memory_space<vmem>>, vector<32x128xf32>
    %c0_1 = arith.constant 0 : index
    %c0_2 = arith.constant 0 : index
    %1 = vector.load %arg2[%c0_1, %c0_2] : memref<32x512xf32, #tpu.memory_space<vmem>>, vector<32x128xf32>
    %2 = arith.addf %1, %0 : vector<32x128xf32>
    %c0_3 = arith.constant 0 : index
    %c0_4 = arith.constant 0 : index
    %3 = vector.load %arg4[%c0_3, %c0_4] : memref<32x512xf32, #tpu.memory_space<vmem>>, vector<32x128xf32>
    tpu.vector_store %arg4[%c0_3, %c0_4], %2 {strides = array<i32>} : memref<32x512xf32, #tpu.memory_space<vmem>>, vector<32x128xf32>,
    %c0_5 = arith.constant 0 : index
    %c128 = arith.constant 128 : index
    %4 = vector.load %arg2[%c0_5, %c128] : memref<32x512xf32, #tpu.memory_space<vmem>>, vector<32x128xf32>
    %5 = arith.addf %4, %0 : vector<32x128xf32>
    %c0_6 = arith.constant 0 : index
    %c128_7 = arith.constant 128 : index
    %6 = vector.load %arg4[%c0_6, %c128_7] : memref<32x512xf32, #tpu.memory_space<vmem>>, vector<32x128xf32>
    tpu.vector_store %arg4[%c0_6, %c128_7], %5 {strides = array<i32>} : memref<32x512xf32, #tpu.memory_space<vmem>>, vector<32x128xf32>,
    %c0_8 = arith.constant 0 : index
    %c256 = arith.constant 256 : index
    %7 = vector.load %arg2[%c0_8, %c256] : memref<32x512xf32, #tpu.memory_space<vmem>>, vector<32x128xf32>
    %8 = arith.addf %7, %0 : vector<32x128xf32>
    %c0_9 = arith.constant 0 : index
    %c256_10 = arith.constant 256 : index
    %9 = vector.load %arg4[%c0_9, %c256_10] : memref<32x512xf32, #tpu.memory_space<vmem>>, vector<32x128xf32>
    tpu.vector_store %arg4[%c0_9, %c256_10], %8 {strides = array<i32>} : memref<32x512xf32, #tpu.memory_space<vmem>>, vector<32x128xf32>,
    %c0_11 = arith.constant 0 : index
    %c384 = arith.constant 384 : index
    %10 = vector.load %arg2[%c0_11, %c384] : memref<32x512xf32, #tpu.memory_space<vmem>>, vector<32x128xf32>
    %11 = arith.addf %10, %0 : vector<32x128xf32>
    %c0_12 = arith.constant 0 : index
    %c384_13 = arith.constant 384 : index
    %12 = vector.load %arg4[%c0_12, %c384_13] : memref<32x512xf32, #tpu.memory_space<vmem>>, vector<32x128xf32>
    tpu.vector_store %arg4[%c0_12, %c384_13], %11 {strides = array<i32>} : memref<32x512xf32, #tpu.memory_space<vmem>>, vector<32x128xf32>,
    return
  }
  func.func @transform_0(%arg0: i32, %arg1: i32) -> (i32, i32) {
    %c0_i32 = arith.constant 0 : i32
    return %arg0, %arg1 : i32, i32
  }
  func.func @transform_1(%arg0: i32, %arg1: i32) -> (i32, i32) {
    %c0_i32 = arith.constant 0 : i32
    %c0_i32_0 = arith.constant 0 : i32
    return %arg0, %c0_i32 : i32, i32
  }
  func.func @transform_2(%arg0: i32, %arg1: i32) -> (i32, i32) {
    %c0_i32 = arith.constant 0 : i32
    return %arg0, %arg1 : i32, i32
  }
}

</mosaic_0001>

<bundles_post_ra>
// kernel: tpu_custom_call.1
= control target key start
LH: loop header
LB: loop body
LE: loop exit
PB: predicated region body
PF: predicated region fallthrough
CT: control target
= control target key end

     0   :  { %7 = vsyncpa [#allocation3], 0  ;;  %s883_s0 = inlined_call_operand.hbm [shape: f32[64,512], index: 0, kind: input, shape index: {}]   ;;  %s884_s1 = inlined_call_operand.hbm [shape: f32[64,128], index: 1, kind: input, shape index: {}]   ;;  %s885_s2 = inlined_call_operand.hbm [shape: f32[64,512], index: 2, kind: output, shape index: {}]  }
   0x1   :  { %9 = vsyncpa [#allocation3 + $0x1], 0 }
   0x2   :  { %10 = vsyncpa [#allocation6], 0 }
   0x3   :  { %12 = vsyncpa [#allocation6 + $0x1], 0 }
   0x4   :  { %13 = vsyncpa [#allocation4], 0 }
   0x5   :  { %15 = vsyncpa [#allocation4 + $0x1], 0  ;;  %s670_s9 = smov 0   ;;  %s672_s10 = smov 0  }
   0x6   :  { %s674_s11 = smov 0   ;;  %s676_s12 = smov 0  }
   0x7   :  { %s678_s13 = smov 0   ;;  %s680_s14 = smov 0  }
   0x8 LB: > { %s405_s15 = sadd.s32 4294967295, %s644_s14   ;;  %s406_s16 = sadd.s32 4294967294, %s644_s14   ;;  %s644_s14 = sphi %s680_s14, %s21_s14   ;;  %s640_s13 = sphi %s678_s13, %s896_s13   ;;  %s636_s12 = sphi %s676_s12, %s895_s12   ;;  %s632_s11 = sphi %s674_s11, %s894_s11   ;;  %s628_s10 = sphi %s672_s10, %s893_s10   ;;  %s624_s9 = sphi %s670_s9, %s892_s9  }
   0x9   : > { %s33_s17 = sadd.s32 1, %s640_s13  ;;  %s42_s18 = sadd.s32 1, %s632_s11 }
   0xa   : > { %p35_p0 = scmp.ge.s32.totalorder %s33_s17, 2  ;;  %p49_p1 = scmp.ne.s32.totalorder %s632_s11, %s628_s10 }
   0xb   : > { %p50_p2 = scmp.eq.s32.totalorder %s644_s14, 0  ;;  %p55_p3 = scmp.ne.s32.totalorder %s628_s10, %s624_s9 }
   0xc   : > { %s898_s17 = smov (%p35_p0, %s33_s17), 0  ;;  %p56_p5 = scmp.eq.s32.totalorder %s405_s15, 0 }
   0xd   : > { %p711_p4 = por %p50_p2, %p49_p1  ;;  %s37_s20 = ssub.s32 %s640_s13, %s898_s17 }
   0xe   : > { %p107_p6 = scmp.eq.s32.totalorder %s405_s15, 1  ;;  %p40_p7 = scmp.eq.s32.totalorder %s37_s20, 0 }
   0xf   : > { %p717_p8 = por %p56_p5, %p55_p3  ;;  %p113_p10 = scmp.eq.s32.totalorder %s406_s16, 1 }
  0x10   : > { %p721_p9 = por %p107_p6, %p49_p1  ;;  %p408_p12 = scmp.ge.s32.totalorder %s644_s14, 2 }
  0x11   : > { %s726_s23 = scalar_select %p40_p7, %s632_s11, %s42_s18  }
  0x12   : > { %p728_p11 = por %p113_p10, %p55_p3  ;;  %p448_p13 = scmp.lt.s32.totalorder %s644_s14, 2 }
  0x13   : > { %s735_s25 = sand.u32 1, %s632_s11   ;;  %s427_s27 = sshll.u32 %s640_s13, 11 }
  0x14   : > { %s409_s26 = sshll.u32 %s735_s25, 7  ;;  %s146_s30 = scalar_lea.hbm %s883_s0, %s427_s27 }
  0x15   : > { %s137_s3 = scalar_lea.vmem [#allocation2], %s409_s26  ;;  %p744_p0 = pnand %p448_p13, %p711_p4 }
  0x16   : > { %s147_s4 = sshll.u32 %s137_s3, 4  ;;  %p416_p1 = scmp.ge.s32.totalorder %s644_s14, 1  ;;  %s148_s4 = int_to_ptr.vmem [resolvable:$true] %s147_s4 }
  0x17   : > { %s134_s6 = scalar_lea.sflag [#allocation3], %s735_s25  ;;  %p506_p2 = pneg %p744_p0 }
  0x18   : > { %s517_s7 = scalar_lea.vmem %s148_s4, 2048  ;;  %s646_s8 = smov [#allocation2]  }
  0x19   : > { %p518_p3 = scmp.ne.s32.totalorder %s148_s4, %s517_s7  ;;  %s522_s15 = sshll.u32 %s646_s8, 4  ;;  %s523_s15 = int_to_ptr.vmem [resolvable:$false] %s522_s15 }
  0x1a   : > { %s524_s16 = scalar_lea.vmem %s523_s15, 4096  ;;  %p525_p4 = scmp.lt.s32.totalorder %s148_s4, %s523_s15 }
  0x1b   : > { %p520_p5 = pnand %p518_p3, %p506_p2  ;;  %p526_p7 = scmp.lt.s32.totalorder %s524_s16, %s517_s7 }
  0x1d   : > { %p521_p6 = pneg %p520_p5  ;;  %p527_p10 = por %p526_p7, %p525_p4 }
  0x1f   : > { %p528_p13 = pnand %p527_p10, %p521_p6 }
  0x21   : > { %531 = shalt.err (!%p528_p13)
}
  0x22   : > { %s647_s18 = smov 512   ;;  %s648_s19 = smov 32  }
  0x23   : > { %440 = dma.hbm_to_vmem [thread:$0]  (!%p744_p0), %s146_s30, 2048, %s148_s4, %s134_s6, %s647_s18, %s647_s18, %s648_s19  }
  0x24   : > { %p176_p3 = scmp.lt.s32.totalorder %s644_s14, 3  ;;  %s413_s20 = sshll.u32 %s735_s25, 5 }
  0x25   : > { %s428_s26 = sshll.u32 %s640_s13, 9  ;;  %s161_s7 = scalar_lea.vmem [#allocation5], %s413_s20 }
  0x26   : > { %p762_p5 = pnand %p416_p1, %p176_p3  ;;  %s167_s3 = scalar_lea.hbm %s884_s1, %s428_s26 }
  0x27   : > { %s168_s8 = sshll.u32 %s161_s7, 4  ;;  %s158_s15 = scalar_lea.sflag [#allocation6], %s735_s25  ;;  %s169_s8 = int_to_ptr.vmem [resolvable:$true] %s168_s8 }
  0x28   : > { %s545_s16 = scalar_lea.vmem %s169_s8, 512  ;;  %s649_s30 = smov [#allocation5]  }
  0x29   : > { %p546_p6 = scmp.ne.s32.totalorder %s169_s8, %s545_s16  ;;  %s550_s4 = sshll.u32 %s649_s30, 4  ;;  %s551_s4 = int_to_ptr.vmem [resolvable:$false] %s550_s4 }
  0x2a   : > { %s552_s6 = scalar_lea.vmem %s551_s4, 1024  ;;  %p553_p1 = scmp.lt.s32.totalorder %s169_s8, %s551_s4 }
  0x2b   : > { %p548_p4 = pnand %p546_p6, %p506_p2  ;;  %p554_p10 = scmp.lt.s32.totalorder %s552_s6, %s545_s16 }
  0x2d   : > { %p549_p7 = pneg %p548_p4  ;;  %p555_p13 = por %p554_p10, %p553_p1 }
  0x2f   : > { %p556_p3 = pnand %p555_p13, %p549_p7 }
  0x31   : > { %559 = shalt.err (!%p556_p3)
}
  0x32   : > { %s650_s18 = smov 128   ;;  %s651_s19 = smov 8  }
  0x33   : > { %443 = dma.hbm_to_vmem [thread:$0]  (!%p744_p0), %s167_s3, 512, %s169_s8, %s158_s15, %s650_s18, %s650_s18, %s651_s19  }
  0x34   : > { %180 = sbr.rel (%p762_p5) target bundleno = 87 (0x57), region = 28  ;;  %s778_s25 = sand.u32 (!%p762_p5), 1, %s628_s10  }
  0x35   : > { %s417_s20 = sshll.u32 (!%p762_p5), %s778_s25, 7  ;;  %s183_s26 = scalar_lea.sflag (!%p762_p5), [#allocation3], %s778_s25 }
  0x36   : > { %s782_s28 = scalar_lea.vmem (!%p762_p5), [#allocation2], %s417_s20 }
  0x39   : > { %611 = dma.done.wait (%p717_p8), %s183_s26, 2048  }
  0x3a   : > { %613 = vsyncadd (%p717_p8), %s183_s26, 4294965248  ;;  %s418_s5 = sshll.u32 %s778_s25, 5  ;;  %s192_s27 = scalar_lea.sflag [#allocation6], %s778_s25 }
  0x3b   : > { %s195_s29 = scalar_lea.vmem [#allocation5], %s418_s5 }
  0x3c   : > { %615 = dma.done.wait (%p717_p8), %s192_s27, 512  }
  0x3d   : > { %617 = vsyncadd (%p717_p8), %s192_s27, 4294966784  ;;  %v226_v0 = vld [vmem:[%s195_s29] sm:$0xff]  ;;  %v227_v2 = vld [vmem:[%s195_s29 + $0x8] sm:$0xff]  ;;  %s799_s21 = scalar_lea.vmem [#allocation7], %s417_s20  ;;  %s430_s3 = sshll.u32 %s636_s12, 11 }
  0x3e   : > { %v230_v1 = vld [vmem:[%s782_s28] sm:$0xff]  ;;  %v228_v5 = vld [vmem:[%s195_s29 + $0x10] sm:$0xff]  ;;  %v229_v9 = vld [vmem:[%s195_s29 + $0x18] sm:$0xff]  ;;  %s295_s7 = sshll.u32 %s799_s21, 4  ;;  %s825_s15 = scalar_lea.hbm %s885_s2, %s430_s3  ;;  %s827_s7 = int_to_ptr.vmem [resolvable:$true] %s295_s7 }
  0x3f   : > { %v234_v3 = vadd.f32 %v230_v1, %v226_v0  ;;  %v231_v4 = vld [vmem:[%s782_s28 + $0x20] sm:$0xff]  ;;  %v242_v11 = vld [vmem:[%s782_s28 + $0x8] sm:$0xff]  ;;  %v254_v20 = vld [vmem:[%s782_s28 + $0x10] sm:$0xff]  ;;  %s279_s16 = scalar_lea.sflag [#allocation4], %s778_s25  ;;  %s560_s30 = scalar_lea.vmem %s827_s7, 2048 }
  0x40   : > { %v232_v6 = vld [vmem:[%s782_s28 + $0x40] sm:$0xff]  ;;  %v235_v7 = vadd.f32 %v231_v4, %v227_v2  ;;  %v246_v13 = vadd.f32 %v242_v11, %v226_v0  ;;  %v243_v14 = vld [vmem:[%s782_s28 + $0x28] sm:$0xff]  ;;  %v255_v21 = vld [vmem:[%s782_s28 + $0x30] sm:$0xff]  ;;  %v258_v23 = vadd.f32 %v254_v20, %v226_v0  ;;  %p561_p8 = scmp.ne.s32.totalorder %s827_s7, %s560_s30  ;;  %s652_s4 = smov [#allocation7]  }
  0x41   : > { %v236_v8 = vadd.f32 %v232_v6, %v228_v5  ;;  %v233_v10 = vld [vmem:[%s782_s28 + $0x60] sm:$0xff]  ;;  %238 = vst [vmem:[%s799_s21] sm:$0xff] %v234_v3  ;;  %v244_v15 = vld [vmem:[%s782_s28 + $0x48] sm:$0xff]  ;;  %v247_v17 = vadd.f32 %v243_v14, %v227_v2  ;;  %v256_v22 = vld [vmem:[%s782_s28 + $0x50] sm:$0xff]  ;;  %v259_v24 = vadd.f32 %v255_v21, %v227_v2  ;;  %s564_s6 = sshll.u32 %s652_s4, 4  ;;  %s565_s6 = int_to_ptr.vmem [resolvable:$false] %s564_s6 }
  0x42   : > { %v237_v12 = vadd.f32 %v233_v10, %v229_v9  ;;  %v245_v16 = vld [vmem:[%s782_s28 + $0x68] sm:$0xff]  ;;  %239 = vst [vmem:[%s799_s21 + $0x20] sm:$0xff] %v235_v7  ;;  %v248_v18 = vadd.f32 %v244_v15, %v228_v5  ;;  %250 = vst [vmem:[%s799_s21 + $0x8] sm:$0xff] %v246_v13  ;;  %v260_v25 = vadd.f32 %v256_v22, %v228_v5  ;;  %v257_v26 = vld [vmem:[%s782_s28 + $0x70] sm:$0xff]  ;;  %p562_p0 = pnand %p561_p8, %p721_p9  ;;  %s566_s18 = scalar_lea.vmem %s565_s6, 4096 }
  0x43   : > { %240 = vst [vmem:[%s799_s21 + $0x40] sm:$0xff] %v236_v8  ;;  %v249_v19 = vadd.f32 %v245_v16, %v229_v9  ;;  %v266_v27 = vld [vmem:[%s782_s28 + $0x18] sm:$0xff]  ;;  %251 = vst [vmem:[%s799_s21 + $0x28] sm:$0xff] %v247_v17  ;;  %v261_v29 = vadd.f32 %v257_v26, %v229_v9  ;;  %p567_p5 = scmp.lt.s32.totalorder %s827_s7, %s565_s6  ;;  %p568_p6 = scmp.lt.s32.totalorder %s566_s18, %s560_s30 }
  0x44   : > { %241 = vst [vmem:[%s799_s21 + $0x60] sm:$0xff] %v237_v12  ;;  %v267_v28 = vld [vmem:[%s782_s28 + $0x38] sm:$0xff]  ;;  %252 = vst [vmem:[%s799_s21 + $0x48] sm:$0xff] %v248_v18  ;;  %v270_v30 = vadd.f32 %v266_v27, %v226_v0  ;;  %p563_p2 = pneg %p562_p0 }
  0x45   : > { %253 = vst [vmem:[%s799_s21 + $0x68] sm:$0xff] %v249_v19  ;;  %v271_v31 = vadd.f32 %v267_v28, %v227_v2  ;;  %v268_v32 = vld [vmem:[%s782_s28 + $0x58] sm:$0xff]  ;;  %262 = vst [vmem:[%s799_s21 + $0x10] sm:$0xff] %v258_v23  ;;  %p569_p4 = por %p568_p6, %p567_p5 }
  0x46   : > { %v269_v33 = vld [vmem:[%s782_s28 + $0x78] sm:$0xff]  ;;  %263 = vst [vmem:[%s799_s21 + $0x30] sm:$0xff] %v259_v24  ;;  %264 = vst [vmem:[%s799_s21 + $0x50] sm:$0xff] %v260_v25  ;;  %v272_v34 = vadd.f32 %v268_v32, %v228_v5 }
  0x47   : > { %v273_v35 = vadd.f32 %v269_v33, %v229_v9  ;;  %265 = vst [vmem:[%s799_s21 + $0x70] sm:$0xff] %v261_v29  ;;  %274 = vst [vmem:[%s799_s21 + $0x18] sm:$0xff] %v270_v30  ;;  %p570_p7 = pnand %p569_p4, %p563_p2 }
  0x48   : > { %275 = vst [vmem:[%s799_s21 + $0x38] sm:$0xff] %v271_v31  ;;  %276 = vst [vmem:[%s799_s21 + $0x58] sm:$0xff] %v272_v34 }
  0x49   : > { %277 = vst [vmem:[%s799_s21 + $0x78] sm:$0xff] %v273_v35 }
  0x4a   : > { %573 = shalt.err (!%p570_p7)
}
  0x4b   : > { %s574_s19 = scalar_lea.hbm %s825_s15, 2048  ;;  %s578_s28 = scalar_lea.hbm %s885_s2, 4096 }
  0x4c   : > { %p575_p1 = scmp.ne.s32.totalorder %s825_s15, %s574_s19  ;;  %p579_p3 = scmp.lt.s32.totalorder %s825_s15, %s885_s2 }
  0x4d   : > { %p580_p8 = scmp.lt.s32.totalorder %s578_s28, %s574_s19 }
  0x4e   : > { %p576_p10 = pnand %p575_p1, %p721_p9 }
  0x4f   : > { %p581_p0 = por %p580_p8, %p579_p3 }
  0x50   : > { %p577_p13 = pneg %p576_p10 }
  0x52   : > { %p582_p2 = pnand %p581_p0, %p577_p13 }
  0x54   : > { %585 = shalt.err (!%p582_p2)
}
  0x55   : > { %s653_s29 = smov 512   ;;  %s654_s21 = smov 32  }
  0x56   : > { %435 = dma.vmem_to_hbm [thread:$0]  (%p721_p9), %s827_s7, 2048, %s825_s15, %s279_s16, %s653_s29, %s653_s29, %s654_s21  }
  0x57 PF: > { %s310_s3 = sand.u32 1, %s624_s9   ;;  %p445_p5 = pnand %p408_p12, %p728_p11 }
  0x58   : > { %s311_s12 = scalar_lea.sflag [#allocation4], %s310_s3 }
  0x59   : > { %p446_p6 = pneg %p445_p5 }
  0x5b   : > { %619 = dma.done.wait (%p446_p6), %s311_s12, 2048  }
  0x5c   : > { %621 = vsyncadd (%p446_p6), %s311_s12, 4294965248  ;;  %s21_s14 = sadd.s32 1, %s644_s14   ;;  %s892_s9 = smov %s628_s10 }
  0x5d   : > { %p18_p4 = scmp.ge.s32.totalorder %s21_s14, 4   ;;  %s893_s10 = smov %s632_s11 }
  0x5e   : > { %s894_s11 = smov %s726_s23  ;;  %s895_s12 = smov %s640_s13 }
  0x5f   : > { %s896_s13 = smov %s898_s17  ;;  %20 = sbr.rel (!%p18_p4) target bundleno = 8 (0x8), region = 86 }
  0x64   :  { %316 = vsyncpa [#allocation3], 1 }
  0x65   :  { %318 = vsyncpa [#allocation3 + $0x1], 1 }
  0x66   :  { %319 = vsyncpa [#allocation6], 1 }
  0x67   :  { %321 = vsyncpa [#allocation6 + $0x1], 1 }
  0x68   :  { %322 = vsyncpa [#allocation4], 1 }
  0x69   :  { %324 = vsyncpa [#allocation4 + $0x1], 1 }

</bundles_post_ra>
